<compile_context>
chip_gen: v7x
topology: tpu7x:2x2x1
jax: 0.10.0
libtpu: 0.0.40
codegen_flags: <defaults>
</compile_context>

<pallas_src>
import jax
import jax.numpy as jnp
from jax.experimental import pallas as pl
from jax.experimental.pallas import tpu as pltpu


def _identity_kernel(x_ref, o_ref):
    # Elementwise pass-through of the current VMEM tile.
    o_ref[...] = x_ref[...]


_TILE_BYTES = 4 * 1024 * 1024            # per-tile; pipelined footprint ~4x = 16 MiB
_VMEM_LIMIT_BYTES = 32 * 1024 * 1024     # explicit scoped-VMEM limit (safe on v5e/v6e/v7x)
_MEGACORE_SPLIT_BYTES = 2 * 1024 * 1024  # above this, force >=2 grid steps (v7x 2 TCs)
_LANE_CANDIDATES = (1024, 512, 256, 128)


def _sublane_granule(itemsize: int) -> int:
    """Native sublane tile height: 8 for f32, 16 for bf16, 32 for int8/fp8."""
    return max(8, (8 * 4) // max(1, itemsize))


def _lane_dense_cols(total: int):
    """Pick a lane-dense column width (multiple of 128) and required padding."""
    for lanes in _LANE_CANDIDATES:
        if total % lanes == 0:
            return lanes, 0
    cols = 128
    pad = (-total) % cols
    return cols, pad


def _pick_tile_rows(rows: int, cols: int, itemsize: int, granule: int) -> int:
    """Tile height: full extent for small arrays, else >=2 VMEM-sized tiles."""
    total_bytes = rows * cols * itemsize
    if total_bytes <= _MEGACORE_SPLIT_BYTES or rows <= 2 * granule:
        return rows  # single full-extent block (exempt from (8,128) divisibility)
    row_bytes = cols * itemsize
    max_rows = max(granule, (_TILE_BYTES // row_bytes) // granule * granule)
    half_rows = max(granule, (rows // 2) // granule * granule)
    tr = min(max_rows, half_rows)
    # Prefer a tr that divides rows evenly (no ragged masked tail block).
    lo = max(granule, tr - 8 * granule)
    for cand in range(tr, lo - 1, -granule):
        if cand > 0 and rows % cand == 0:
            return cand
    return tr


def _pallas_identity_copy(x: jax.Array, *, donate: bool) -> jax.Array:
    orig_shape = x.shape
    dtype = x.dtype
    total = x.size
    if total == 0:
        return x

    itemsize = jnp.dtype(dtype).itemsize
    granule = _sublane_granule(itemsize)

    cols, pad = _lane_dense_cols(total)
    flat = x.reshape(-1)
    if pad:
        flat = jnp.concatenate([flat, jnp.zeros((pad,), dtype=dtype)])
        donate = False  # padded shape != input shape, aliasing impossible
    rows = (total + pad) // cols
    x2 = flat.reshape(rows, cols)  # row-major reshape: layout plumbing only

    tr = _pick_tile_rows(rows, cols, itemsize, granule)
    grid = (pl.cdiv(rows, tr),)

    out2 = pl.pallas_call(
        _identity_kernel,
        out_shape=jax.ShapeDtypeStruct((rows, cols), dtype),
        grid=grid,
        in_specs=[pl.BlockSpec((tr, cols), lambda i: (i, 0))],
        out_specs=pl.BlockSpec((tr, cols), lambda i: (i, 0)),
        # Only alias when the caller explicitly donates the input buffer;
        # otherwise XLA would insert a defensive copy (3N instead of 2N bytes).
        input_output_aliases={0: 0} if donate else {},
        compiler_params=pltpu.CompilerParams(
            dimension_semantics=("parallel",),
            vmem_limit_bytes=_VMEM_LIMIT_BYTES,
        ),
    )(x2)

    out_flat = out2.reshape(-1)
    if pad:
        out_flat = out_flat[:total]
    return out_flat.reshape(orig_shape)


def base_model_forward(x: jax.Array, *, force_copy: bool = False,
                       donate: bool = False) -> jax.Array:
    """Pallas implementation of BaseModel.forward semantics (identity).

    Default path returns the input untouched (zero HBM traffic, zero launch
    overhead).  Set force_copy=True to materialize a fresh buffer via the
    tiled Pallas copy kernel; set donate=True only when the input buffer is
    actually donated under jit.
    """
    if not force_copy:
        return x
    return _pallas_identity_copy(x, donate=donate)


def get_num_parameters() -> int:
    """BaseModel defines no trainable parameters in __init__."""
    return 0


if __name__ == "__main__":
    key = jax.random.PRNGKey(0)

    # Small NCHW input consistent with an image-model forward signature.
    x = jax.random.normal(key, (2, 4, 16, 16), dtype=jnp.float32)

    # Default production path: pure identity bypass (no kernel launch).
    y_fast = base_model_forward(x)
    jax.block_until_ready(y_fast)
    assert y_fast.shape == x.shape and y_fast.dtype == x.dtype
    assert bool(jnp.allclose(y_fast, x))

    # Forced materialized copy: exercises the Pallas kernel (single tile).
    y = base_model_forward(x, force_copy=True)
    jax.block_until_ready(y)
    assert y.shape == x.shape and y.dtype == x.dtype
    assert bool(jnp.allclose(y, x))

    # Awkward size (total % 128 != 0) -> padded lane-dense path.
    x_odd = jax.random.normal(key, (3, 5, 7), dtype=jnp.float32)
    y_odd = base_model_forward(x_odd, force_copy=True)
    jax.block_until_ready(y_odd)
    assert y_odd.shape == x_odd.shape and bool(jnp.allclose(y_odd, x_odd))

    # bf16 (sub-32-bit sublane packing) single-block path.
    x_bf = x.astype(jnp.bfloat16)
    y_bf = base_model_forward(x_bf, force_copy=True)
    jax.block_until_ready(y_bf)
    assert y_bf.dtype == jnp.bfloat16 and bool(jnp.all(y_bf == x_bf))

    # Larger (4 MiB) input -> multi-tile grid, >=2 steps for v7x megacore.
    x_big = jax.random.normal(key, (8, 8, 128, 128), dtype=jnp.float32)
    y_big = base_model_forward(x_big, force_copy=True)
    jax.block_until_ready(y_big)
    assert y_big.shape == x_big.shape and bool(jnp.allclose(y_big, x_big))

    assert get_num_parameters() == 0

    print("KERNEL_OK")
</pallas_src>

<mosaic_0001>
module attributes {stable_mosaic.version = 11 : i64} {
  func.func @_identity_kernel(%arg0: i32, %arg1: memref<2x1024xf32, #tpu.memory_space<vmem>>, %arg2: memref<2x1024xf32, #tpu.memory_space<vmem>>) attributes {dimension_semantics = [#tpu.dimension_semantics<parallel>], iteration_bounds = array<i64: 1>, scalar_prefetch = 0 : i64, scratch_operands = 0 : i64, tpu.core_type = #tpu.core_type<tc>, window_params = [{transform_indices = @transform_0, window_bounds = array<i64: 2, 1024>}, {transform_indices = @transform_1, window_bounds = array<i64: 2, 1024>}]} {
    %c0 = arith.constant 0 : index
    %c0_0 = arith.constant 0 : index
    %0 = vector.load %arg1[%c0, %c0_0] : memref<2x1024xf32, #tpu.memory_space<vmem>>, vector<2x1024xf32>
    %c0_1 = arith.constant 0 : index
    %c0_2 = arith.constant 0 : index
    %1 = vector.load %arg2[%c0_1, %c0_2] : memref<2x1024xf32, #tpu.memory_space<vmem>>, vector<2x1024xf32>
    tpu.vector_store %arg2[%c0_1, %c0_2], %0 {strides = array<i32>} : memref<2x1024xf32, #tpu.memory_space<vmem>>, vector<2x1024xf32>,
    return
  }
  func.func @transform_0(%arg0: i32) -> (i32, i32) {
    %c0_i32 = arith.constant 0 : i32
    %c0_i32_0 = arith.constant 0 : i32
    return %arg0, %c0_i32 : i32, i32
  }
  func.func @transform_1(%arg0: i32) -> (i32, i32) {
    %c0_i32 = arith.constant 0 : i32
    %c0_i32_0 = arith.constant 0 : i32
    return %arg0, %c0_i32 : i32, i32
  }
}

</mosaic_0001>

<bundles_post_ra>
// kernel: tpu_custom_call.1
= control target key start
LH: loop header
LB: loop body
LE: loop exit
PB: predicated region body
PF: predicated region fallthrough
CT: control target
= control target key end

     0   :  { %6 = vsyncpa [#allocation3], 0  ;;  %s126_s0 = inlined_call_operand.hbm [shape: f32[2,1024], index: 0, kind: input, shape index: {}]   ;;  %s127_s1 = inlined_call_operand.hbm [shape: f32[2,1024], index: 1, kind: output, shape index: {}]  }
   0x1   :  { %7 = vsyncpa [#allocation4], 0  ;;  %s90_s6 = smov [#allocation2]   ;;  %s42_s10 = scalar_lea.hbm %s126_s0, 256 }
   0x2   :  { %s14_s7 = sshll.u32 %s90_s6, 4  ;;  %p43_p0 = scmp.ne.s32.totalorder %s126_s0, %s42_s10  ;;  %s15_s7 = int_to_ptr.vmem [resolvable:$true] %s14_s7 }
   0x3   :  { %p46_p1 = scmp.lt.u32.totalorder %s42_s10, %s126_s0 }
   0x5   :  { %p48_p2 = pnand %p46_p1, %p43_p0 }
   0x7   :  { %51 = shalt.err (!%p48_p2)
}
   0x8   :  { %s52_s15 = scalar_lea.vmem %s15_s7, 256  ;;  %p57_p4 = scmp.lt.s32.totalorder %s15_s7, %s15_s7 }
   0x9   :  { %p53_p3 = scmp.ne.s32.totalorder %s15_s7, %s52_s15  ;;  %p58_p5 = scmp.lt.s32.totalorder %s52_s15, %s52_s15 }
   0xb   :  { %p59_p6 = por %p58_p5, %p57_p4 }
   0xd   :  { %p60_p7 = pnand %p59_p6, %p53_p3 }
   0xf   :  { %63 = shalt.err (!%p60_p7)
}
  0x10   :  { %17 = dma.hbm_to_vmem [thread:$0]  %s126_s0, 256, %s15_s7, [#allocation3]  }
  0x11   :  { %86 = dma.done.wait [#allocation3], 256  }
  0x12   :  { %87 = vsyncadd [#allocation3], 4294967040  ;;  %s91_s18 = smov [#allocation5]   ;;  %v21_v0 = vld [vmem:[#allocation2] sm:$0xff]  ;;  %v22_v1 = vld [vmem:[#allocation2 + $0x8] sm:$0xff] }
  0x13   :  { %s31_s19 = sshll.u32 %s91_s18, 4  ;;  %23 = vst [vmem:[#allocation5] sm:$0xff] %v21_v0  ;;  %24 = vst [vmem:[#allocation5 + $0x8] sm:$0xff] %v22_v1  ;;  %s32_s19 = int_to_ptr.vmem [resolvable:$true] %s31_s19 }
  0x14   :  { %s64_s20 = scalar_lea.vmem %s32_s19, 256  ;;  %p69_p9 = scmp.lt.s32.totalorder %s32_s19, %s32_s19 }
  0x15   :  { %p65_p8 = scmp.ne.s32.totalorder %s32_s19, %s64_s20  ;;  %p70_p10 = scmp.lt.s32.totalorder %s64_s20, %s64_s20 }
  0x17   :  { %p71_p11 = por %p70_p10, %p69_p9 }
  0x19   :  { %p72_p12 = pnand %p71_p11, %p65_p8 }
  0x1b   :  { %75 = shalt.err (!%p72_p12)
}
  0x1c   :  { %s76_s0 = scalar_lea.hbm %s127_s1, 256 }
  0x1d   :  { %p77_p13 = scmp.ne.s32.totalorder %s127_s1, %s76_s0  ;;  %p80_p0 = scmp.lt.u32.totalorder %s76_s0, %s127_s1 }
  0x1f   :  { %p82_p1 = pnand %p80_p0, %p77_p13 }
  0x21   :  { %85 = shalt.err (!%p82_p1)
}
  0x22   :  { %34 = dma.vmem_to_hbm [thread:$0]  %s32_s19, 256, %s127_s1, [#allocation4]  }
  0x23   :  { %88 = dma.done.wait [#allocation4], 256  }
  0x24   :  { %89 = vsyncadd [#allocation4], 4294967040 }
  0x25   :  { %38 = vsyncpa [#allocation3], 1 }
  0x26   :  { %39 = vsyncpa [#allocation4], 1 }

</bundles_post_ra>
